<compile_context>
chip_gen: v5e
topology: v5e:2x2
jax: 0.10.0
libtpu: 0.0.40
codegen_flags: <defaults>
</compile_context>

<pallas_src>
import functools

import jax
import jax.numpy as jnp
from jax.experimental import pallas as pl
from jax.experimental.pallas import tpu as pltpu

H_PAD = 128          # lane-dense hidden width (real hidden = 16)
FUSED_N_MAX = 2048   # small-graph fast path threshold (A bf16 <= 8 MiB)
MIB = 1024 * 1024


def _round_up(x, m):
    return (x + m - 1) // m * m


def _pick_tile(n_pad, candidates, min_tiles=1):
    for c in candidates:
        if n_pad % c == 0 and n_pad // c >= min_tiles:
            return c
    return 128


# --------------------- small-graph fast path: whole forward in one kernel ---------------------
def _fused_kernel(a_ref, x_ref, w1_ref, b1_ref, w2_ref, b2_ref, o_ref):
    a = a_ref[...]                                                      # bf16 [n_pad, n_pad]
    xw1 = jnp.dot(x_ref[...], w1_ref[...], preferred_element_type=jnp.float32)
    h1 = jnp.tanh(
        jnp.dot(a, xw1.astype(jnp.bfloat16), preferred_element_type=jnp.float32)
        + b1_ref[...])
    xw2 = jnp.dot(h1, w2_ref[...], preferred_element_type=jnp.float32)
    h2 = jnp.tanh(
        jnp.dot(a, xw2.astype(jnp.bfloat16), preferred_element_type=jnp.float32)
        + b2_ref[...])
    o_ref[...] = h2


def _forward_fused(a_bf16, x_pad, w1_p, b1_p, w2_p, b2_p):
    n_pad, f_in = x_pad.shape
    # working set: A (double-buffered) + activations/params + headroom
    ws = 2 * n_pad * n_pad * 2 + n_pad * (f_in + 6 * H_PAD) * 4 + 2 * H_PAD * H_PAD * 4
    vmem_limit = int(min(ws + 16 * MIB, 48 * MIB))
    cost = pl.CostEstimate(
        flops=2 * n_pad * (f_in * H_PAD + 2 * n_pad * H_PAD + H_PAD * H_PAD),
        transcendentals=2 * n_pad * H_PAD,
        bytes_accessed=n_pad * n_pad * 2 + n_pad * (f_in + H_PAD) * 4
        + (f_in + 2 * H_PAD + 2) * H_PAD * 4,
    )

    def full(shape):
        return pl.BlockSpec(shape, lambda i: (0,) * len(shape))

    return pl.pallas_call(
        _fused_kernel,
        out_shape=jax.ShapeDtypeStruct((n_pad, H_PAD), jnp.float32),
        grid=(1,),
        in_specs=[
            full((n_pad, n_pad)),      # A_hat, bf16, resident
            full((n_pad, f_in)),       # X
            full((f_in, H_PAD)),       # W1
            full((1, H_PAD)),          # b1
            full((H_PAD, H_PAD)),      # W2
            full((1, H_PAD)),          # b2
        ],
        out_specs=full((n_pad, H_PAD)),
        compiler_params=pltpu.CompilerParams(
            dimension_semantics=("arbitrary",),
            vmem_limit_bytes=vmem_limit,
        ),
        cost_estimate=cost,
    )(a_bf16, x_pad, w1_p, b1_p, w2_p, b2_p)


# ------------------ big-graph path: tanh(A @ XW + b) [@ W2], XW resident in VMEM ------------------
def _agg_kernel(*refs, tk, fused):
    if fused:
        a_ref, xw_ref, b_ref, w2_ref, o_ref, acc_ref = refs
    else:
        a_ref, xw_ref, b_ref, o_ref, acc_ref = refs
        w2_ref = None
    k = pl.program_id(1)

    @pl.when(k == 0)
    def _():
        acc_ref[...] = jnp.zeros_like(acc_ref)

    off = pl.multiple_of(k * tk, tk)
    acc_ref[...] += jnp.dot(
        a_ref[...], xw_ref[pl.ds(off, tk), :], preferred_element_type=jnp.float32
    )

    @pl.when(k == pl.num_programs(1) - 1)
    def _():
        h = jnp.tanh(acc_ref[...] + b_ref[...])
        if fused:  # fold the next layer's feature transform into the epilogue
            h = jnp.dot(h, w2_ref[...], preferred_element_type=jnp.float32)
        o_ref[...] = h.astype(o_ref.dtype)


def _aggregate(a_bf16, xw_bf16, b, w2, *, out_dtype, tm, tk):
    n_pad = a_bf16.shape[0]
    fused = w2 is not None
    out_bytes = jnp.dtype(out_dtype).itemsize
    cost = pl.CostEstimate(
        flops=2 * n_pad * n_pad * H_PAD + (2 * n_pad * H_PAD * H_PAD if fused else 0),
        transcendentals=n_pad * H_PAD,
        bytes_accessed=n_pad * n_pad * 2 + n_pad * H_PAD * (2 + out_bytes),
    )

    in_specs = [
        pl.BlockSpec((tm, tk), lambda i, k: (i, k)),          # A tile (only streamed operand)
        pl.BlockSpec((n_pad, H_PAD), lambda i, k: (0, 0)),    # XW fully resident in VMEM
        pl.BlockSpec((1, H_PAD), lambda i, k: (0, 0)),        # bias resident
    ]
    args = [a_bf16, xw_bf16, b]
    if fused:
        in_specs.append(pl.BlockSpec((H_PAD, H_PAD), lambda i, k: (0, 0)))  # W2 resident
        args.append(w2)

    # VMEM budget: A dbuf + XW (dbuf-safe) + acc + out dbuf + W2 + headroom (v7x = 64 MiB phys)
    ws = (2 * tm * tk * 2 + 2 * n_pad * H_PAD * 2 + tm * H_PAD * 4
          + 2 * tm * H_PAD * out_bytes + H_PAD * H_PAD * 4)
    vmem_limit = int(min(ws + 16 * MIB, 48 * MIB))

    kernel = functools.partial(_agg_kernel, tk=tk, fused=fused)
    return pl.pallas_call(
        kernel,
        out_shape=jax.ShapeDtypeStruct((n_pad, H_PAD), out_dtype),
        grid=(n_pad // tm, n_pad // tk),          # rows parallel, reduction last
        in_specs=in_specs,
        out_specs=pl.BlockSpec((tm, H_PAD), lambda i, k: (i, 0)),
        scratch_shapes=[pltpu.VMEM((tm, H_PAD), jnp.float32)],
        compiler_params=pltpu.CompilerParams(
            dimension_semantics=("parallel", "arbitrary"),
            vmem_limit_bytes=vmem_limit,
        ),
        cost_estimate=cost,
    )(*args)


# ------------------------------------- forward wrapper -------------------------------------
def egcn_forward(x, edge_index, w1, b1, w2, b2):
    """x: [N, F_in] float32, edge_index: [2, E] int32 (src row 0, dst row 1)."""
    n, f_in = x.shape
    hidden = w1.shape[1]
    n_pad = _round_up(n, 128)

    # glue: dense GCN-normalized adjacency with self-loops, scattered directly as bf16
    idx = jnp.arange(n, dtype=edge_index.dtype)
    src = jnp.concatenate([edge_index[0], idx])
    dst = jnp.concatenate([edge_index[1], idx])
    deg = jnp.zeros((n,), jnp.float32).at[dst].add(1.0)
    dinv = jnp.where(deg > 0, jax.lax.rsqrt(deg), 0.0)
    norm = (dinv[src] * dinv[dst]).astype(jnp.bfloat16)
    a_bf16 = jnp.zeros((n_pad, n_pad), jnp.bfloat16).at[dst, src].add(norm)

    # pad activations / parameters to lane-dense shapes (padded A cols are exactly zero,
    # so nonzero padded rows of intermediates never leak into real outputs)
    x_pad = jnp.zeros((n_pad, f_in), jnp.float32).at[:n, :].set(x)
    w1_p = jnp.zeros((f_in, H_PAD), jnp.float32).at[:, :hidden].set(w1)
    w2_p = jnp.zeros((H_PAD, H_PAD), jnp.float32).at[:hidden, :hidden].set(w2)
    b1_p = jnp.zeros((1, H_PAD), jnp.float32).at[0, :hidden].set(b1)
    b2_p = jnp.zeros((1, H_PAD), jnp.float32).at[0, :hidden].set(b2)

    if n_pad <= FUSED_N_MAX:
        # single fused kernel: no intermediate HBM traffic, one launch
        h2 = _forward_fused(a_bf16, x_pad, w1_p, b1_p, w2_p, b2_p)
        return h2[:n, :hidden]

    # ---- big-graph path ----
    tm = _pick_tile(n_pad, (512, 256, 128), min_tiles=4)   # >=4 row tiles -> both v7x cores busy
    tk = _pick_tile(n_pad, (2048, 1024, 512, 256, 128))

    # layer-1 feature transform (K = f_in is tiny) stays in plain XLA
    xw1 = (x_pad @ w1_p).astype(jnp.bfloat16)
    # layer-1 aggregation fused with layer-2 feature transform -> XW2 (bf16, no H1 round trip)
    xw2 = _aggregate(a_bf16, xw1, b1_p, w2_p, out_dtype=jnp.bfloat16, tm=tm, tk=tk)
    # layer-2 aggregation + tanh -> final H2 (f32)
    h2 = _aggregate(a_bf16, xw2, b2_p, None, out_dtype=jnp.float32, tm=tm, tk=tk)
    return h2[:n, :hidden]


def egcn_reference(x, edge_index, w1, b1, w2, b2):
    """Pure-JAX f32 reference of the same GCN math (sanity check)."""
    n = x.shape[0]
    src = jnp.concatenate([edge_index[0], jnp.arange(n, dtype=edge_index.dtype)])
    dst = jnp.concatenate([edge_index[1], jnp.arange(n, dtype=edge_index.dtype)])
    deg = jnp.zeros((n,), jnp.float32).at[dst].add(1.0)
    dinv = jnp.where(deg > 0, 1.0 / jnp.sqrt(deg), 0.0)
    norm = dinv[src] * dinv[dst]
    a_hat = jnp.zeros((n, n), jnp.float32).at[dst, src].add(norm)
    h1 = jnp.tanh(a_hat @ (x @ w1) + b1)
    h2 = jnp.tanh(a_hat @ (h1 @ w2) + b2)
    return h2


if __name__ == "__main__":
    key = jax.random.PRNGKey(0)
    k_x, k_e, k_w1, k_w2 = jax.random.split(key, 4)

    N = 16        # number of graph nodes
    F_IN = 8      # lazy in_channels of GCNConv(-1, 16) resolved to 8
    HIDDEN = 16   # out_channels of both GCNConv layers
    E = 32        # number of directed edges

    x = jax.random.normal(k_x, (N, F_IN), dtype=jnp.float32)
    edge_index = jax.random.randint(k_e, (2, E), 0, N, dtype=jnp.int32)

    # deterministic parameter init (Glorot-like scale), bias = 0 as in GCNConv reset
    w1 = jax.random.normal(k_w1, (F_IN, HIDDEN), dtype=jnp.float32) * (1.0 / jnp.sqrt(F_IN))
    b1 = jnp.zeros((HIDDEN,), jnp.float32)
    w2 = jax.random.normal(k_w2, (HIDDEN, HIDDEN), dtype=jnp.float32) * (1.0 / jnp.sqrt(HIDDEN))
    b2 = jnp.zeros((HIDDEN,), jnp.float32)

    fwd = jax.jit(egcn_forward)
    out = jax.block_until_ready(fwd(x, edge_index, w1, b1, w2, b2))

    ref = egcn_reference(x, edge_index, w1, b1, w2, b2)
    assert out.shape == (N, HIDDEN)
    # bf16 adjacency / activations through two tanh layers -> relaxed tolerance
    assert jnp.allclose(out, ref, atol=3e-2, rtol=3e-2), float(jnp.max(jnp.abs(out - ref)))

    print("KERNEL_OK")
</pallas_src>

<mosaic_0001>
module attributes {stable_mosaic.version = 11 : i64} {
  func.func @_fused_kernel(%arg0: i32, %arg1: memref<128x128xbf16, #tpu.memory_space<vmem>>, %arg2: memref<128x8xf32, #tpu.memory_space<vmem>>, %arg3: memref<8x128xf32, #tpu.memory_space<vmem>>, %arg4: memref<1x128xf32, #tpu.memory_space<vmem>>, %arg5: memref<128x128xf32, #tpu.memory_space<vmem>>, %arg6: memref<1x128xf32, #tpu.memory_space<vmem>>, %arg7: memref<128x128xf32, #tpu.memory_space<vmem>>) attributes {dimension_semantics = [#tpu.dimension_semantics<arbitrary>], iteration_bounds = array<i64: 1>, scalar_prefetch = 0 : i64, scratch_operands = 0 : i64, tpu.core_type = #tpu.core_type<tc>, window_params = [{pipeline_mode = #tpu.pipeline_mode<synchronous>, transform_indices = @transform_0, window_bounds = array<i64: 128, 128>}, {pipeline_mode = #tpu.pipeline_mode<synchronous>, transform_indices = @transform_1, window_bounds = array<i64: 128, 8>}, {pipeline_mode = #tpu.pipeline_mode<synchronous>, transform_indices = @transform_2, window_bounds = array<i64: 8, 128>}, {pipeline_mode = #tpu.pipeline_mode<synchronous>, transform_indices = @transform_3, window_bounds = array<i64: 1, 128>}, {pipeline_mode = #tpu.pipeline_mode<synchronous>, transform_indices = @transform_4, window_bounds = array<i64: 128, 128>}, {pipeline_mode = #tpu.pipeline_mode<synchronous>, transform_indices = @transform_5, window_bounds = array<i64: 1, 128>}, {pipeline_mode = #tpu.pipeline_mode<synchronous>, transform_indices = @transform_6, window_bounds = array<i64: 128, 128>}]} {
    %c0 = arith.constant 0 : index
    %c0_0 = arith.constant 0 : index
    %0 = vector.load %arg1[%c0, %c0_0] : memref<128x128xbf16, #tpu.memory_space<vmem>>, vector<128x128xbf16>
    %c0_1 = arith.constant 0 : index
    %c0_2 = arith.constant 0 : index
    %1 = vector.load %arg2[%c0_1, %c0_2] : memref<128x8xf32, #tpu.memory_space<vmem>>, vector<128x8xf32>
    %c0_3 = arith.constant 0 : index
    %c0_4 = arith.constant 0 : index
    %2 = vector.load %arg3[%c0_3, %c0_4] : memref<8x128xf32, #tpu.memory_space<vmem>>, vector<8x128xf32>
    %cst = arith.constant dense<0.000000e+00> : vector<128x128xf32>
    %3 = tpu.matmul %1, %2, %cst {dimension_numbers = #tpu.dot_dimension_numbers<[1], [0], [0], [1], [0, 0, 1, 1], [], []>} : vector<128x8xf32>, vector<8x128xf32>, vector<128x128xf32> -> vector<128x128xf32>
    %4 = arith.truncf %3 : vector<128x128xf32> to vector<128x128xbf16>
    %cst_5 = arith.constant dense<0.000000e+00> : vector<128x128xf32>
    %5 = tpu.matmul %0, %4, %cst_5 {dimension_numbers = #tpu.dot_dimension_numbers<[1], [0], [0], [1], [0, 0, 1, 1], [], []>} : vector<128x128xbf16>, vector<128x128xbf16>, vector<128x128xf32> -> vector<128x128xf32>
    %c0_6 = arith.constant 0 : index
    %c0_7 = arith.constant 0 : index
    %6 = vector.load %arg4[%c0_6, %c0_7] : memref<1x128xf32, #tpu.memory_space<vmem>>, vector<1x128xf32>
    %7 = vector.broadcast %6 : vector<1x128xf32> to vector<128x128xf32>
    %8 = arith.addf %5, %7 : vector<128x128xf32>
    %9 = math.tanh %8 : vector<128x128xf32>
    %c0_8 = arith.constant 0 : index
    %c0_9 = arith.constant 0 : index
    %10 = vector.load %arg5[%c0_8, %c0_9] : memref<128x128xf32, #tpu.memory_space<vmem>>, vector<128x128xf32>
    %cst_10 = arith.constant dense<0.000000e+00> : vector<128x128xf32>
    %11 = tpu.matmul %9, %10, %cst_10 {dimension_numbers = #tpu.dot_dimension_numbers<[1], [0], [0], [1], [0, 0, 1, 1], [], []>} : vector<128x128xf32>, vector<128x128xf32>, vector<128x128xf32> -> vector<128x128xf32>
    %12 = arith.truncf %11 : vector<128x128xf32> to vector<128x128xbf16>
    %cst_11 = arith.constant dense<0.000000e+00> : vector<128x128xf32>
    %13 = tpu.matmul %0, %12, %cst_11 {dimension_numbers = #tpu.dot_dimension_numbers<[1], [0], [0], [1], [0, 0, 1, 1], [], []>} : vector<128x128xbf16>, vector<128x128xbf16>, vector<128x128xf32> -> vector<128x128xf32>
    %c0_12 = arith.constant 0 : index
    %c0_13 = arith.constant 0 : index
    %14 = vector.load %arg6[%c0_12, %c0_13] : memref<1x128xf32, #tpu.memory_space<vmem>>, vector<1x128xf32>
    %15 = vector.broadcast %14 : vector<1x128xf32> to vector<128x128xf32>
    %16 = arith.addf %13, %15 : vector<128x128xf32>
    %17 = math.tanh %16 : vector<128x128xf32>
    %c0_14 = arith.constant 0 : index
    %c0_15 = arith.constant 0 : index
    %18 = vector.load %arg7[%c0_14, %c0_15] : memref<128x128xf32, #tpu.memory_space<vmem>>, vector<128x128xf32>
    tpu.vector_store %arg7[%c0_14, %c0_15], %17 {strides = array<i32>} : memref<128x128xf32, #tpu.memory_space<vmem>>, vector<128x128xf32>,
    return
  }
  func.func @transform_0(%arg0: i32) -> (i32, i32) {
    %c0_i32 = arith.constant 0 : i32
    %c0_i32_0 = arith.constant 0 : i32
    %c0_i32_1 = arith.constant 0 : i32
    return %c0_i32, %c0_i32_0 : i32, i32
  }
  func.func @transform_1(%arg0: i32) -> (i32, i32) {
    %c0_i32 = arith.constant 0 : i32
    %c0_i32_0 = arith.constant 0 : i32
    %c0_i32_1 = arith.constant 0 : i32
    return %c0_i32, %c0_i32_0 : i32, i32
  }
  func.func @transform_2(%arg0: i32) -> (i32, i32) {
    %c0_i32 = arith.constant 0 : i32
    %c0_i32_0 = arith.constant 0 : i32
    %c0_i32_1 = arith.constant 0 : i32
    return %c0_i32, %c0_i32_0 : i32, i32
  }
  func.func @transform_3(%arg0: i32) -> (i32, i32) {
    %c0_i32 = arith.constant 0 : i32
    %c0_i32_0 = arith.constant 0 : i32
    %c0_i32_1 = arith.constant 0 : i32
    return %c0_i32, %c0_i32_0 : i32, i32
  }
  func.func @transform_4(%arg0: i32) -> (i32, i32) {
    %c0_i32 = arith.constant 0 : i32
    %c0_i32_0 = arith.constant 0 : i32
    %c0_i32_1 = arith.constant 0 : i32
    return %c0_i32, %c0_i32_0 : i32, i32
  }
  func.func @transform_5(%arg0: i32) -> (i32, i32) {
    %c0_i32 = arith.constant 0 : i32
    %c0_i32_0 = arith.constant 0 : i32
    %c0_i32_1 = arith.constant 0 : i32
    return %c0_i32, %c0_i32_0 : i32, i32
  }
  func.func @transform_6(%arg0: i32) -> (i32, i32) {
    %c0_i32 = arith.constant 0 : i32
    %c0_i32_0 = arith.constant 0 : i32
    %c0_i32_1 = arith.constant 0 : i32
    return %c0_i32, %c0_i32_0 : i32, i32
  }
}

</mosaic_0001>

<bundles_post_ra>
// kernel: egcn_forward.1
= control target key start
LH: loop header
LB: loop body
LE: loop exit
PB: predicated region body
PF: predicated region fallthrough
CT: control target
= control target key end

     0   :  { %vm56_vm0 = vcmask 64512   ;;  %s891_s2 = inlined_call_operand.vmem [shape: f32[8,128], index: 2, kind: input, shape index: {}]   ;;  %s892_s1 = inlined_call_operand.vmem [shape: f32[128,8], index: 1, kind: input, shape index: {}]   ;;  %s893_s3 = inlined_call_operand.vmem [shape: f32[1,128], index: 3, kind: input, shape index: {}]   ;;  %s894_s0 = inlined_call_operand.vmem [shape: bf16[128,128], index: 0, kind: input, shape index: {}]   ;;  %s895_s4 = inlined_call_operand.vmem [shape: f32[128,128], index: 4, kind: input, shape index: {}]   ;;  %s896_s5 = inlined_call_operand.vmem [shape: f32[1,128], index: 5, kind: input, shape index: {}]   ;;  %s897_s6 = inlined_call_operand.vmem [shape: f32[128,128], index: 6, kind: output, shape index: {}]  }
   0x1   :  { %v55_v0 = vld [vmem:[%s891_s2] sm:$0xff]  ;;  %v40_v2 = vld [vmem:[%s892_s1 + $0x8] sm:$0xff]  ;;  %v41_v3 = vld [vmem:[%s892_s1 + $0x10] sm:$0xff] }
   0x2   :  { %v39_v1 = vld [vmem:[%s892_s1] sm:$0xff]  ;;  %120 = vmatpush.msra.mxu0 %v55_v0  ;;  %v42_v4 = vld [vmem:[%s892_s1 + $0x18] sm:$0xff]  ;;  %v44_v6 = vld [vmem:[%s892_s1 + $0x28] sm:$0xff] }
   0x3   :  { %473 = vmatmul.msk.f32.vlgmr.msra.gmra.mxu0 %vm56_vm0, %v39_v1  ;;  %v43_v5 = vld [vmem:[%s892_s1 + $0x20] sm:$0xff]  ;;  %v45_v7 = vld [vmem:[%s892_s1 + $0x30] sm:$0xff]  ;;  %v46_v8 = vld [vmem:[%s892_s1 + $0x38] sm:$0xff] }
   0x4   :  { %v47_v9 = vld [vmem:[%s892_s1 + $0x40] sm:$0xff]  ;;  %v48_v10 = vld [vmem:[%s892_s1 + $0x48] sm:$0xff]  ;;  %v49_v11 = vld [vmem:[%s892_s1 + $0x50] sm:$0xff] }
   0x5   :  { %v50_v12 = vld [vmem:[%s892_s1 + $0x58] sm:$0xff]  ;;  %v51_v13 = vld [vmem:[%s892_s1 + $0x60] sm:$0xff]  ;;  %v52_v14 = vld [vmem:[%s892_s1 + $0x68] sm:$0xff] }
   0x6   :  { %v53_v15 = vld [vmem:[%s892_s1 + $0x70] sm:$0xff]  ;;  %v54_v16 = vld [vmem:[%s892_s1 + $0x78] sm:$0xff]  ;;  %v700_v41 = vld [vmem:[%s894_s0] sm:$0xff] }
   0x7   :  { %v706_v42 = vld [vmem:[%s894_s0 + $0x8] sm:$0xff]  ;;  %v712_v43 = vld [vmem:[%s894_s0 + $0x10] sm:$0xff]  ;;  %v718_v44 = vld [vmem:[%s894_s0 + $0x18] sm:$0xff] }
   0x8   :  { %v724_v45 = vld [vmem:[%s894_s0 + $0x20] sm:$0xff]  ;;  %v310_v46 = vld [vmem:[%s895_s4 + $0x78] sm:$0xff]  ;;  %v309_v47 = vld [vmem:[%s895_s4 + $0x70] sm:$0xff] }
   0x9   :  { %311 = vmatpush.msra.mxu2 %v310_v46  ;;  %v308_v48 = vld [vmem:[%s895_s4 + $0x68] sm:$0xff]  ;;  %v307_v49 = vld [vmem:[%s895_s4 + $0x60] sm:$0xff]  ;;  %v306_v51 = vld [vmem:[%s895_s4 + $0x58] sm:$0xff] }
   0xa   :  { %v742_v50 = vld [vmem:[%s894_s0 + $0x28] sm:$0xff]  ;;  %v305_v52 = vld [vmem:[%s895_s4 + $0x50] sm:$0xff]  ;;  %v303_v54 = vld [vmem:[%s895_s4 + $0x40] sm:$0xff] }
   0xb   :  { %474 = vmatmul.msk.f32.gmra.mxu0 %vm56_vm0, %v40_v2  ;;  %312 = vmatpush.msra.mxu2 %v309_v47  ;;  %v304_v53 = vld [vmem:[%s895_s4 + $0x48] sm:$0xff]  ;;  %v302_v55 = vld [vmem:[%s895_s4 + $0x38] sm:$0xff]  ;;  %v301_v56 = vld [vmem:[%s895_s4 + $0x30] sm:$0xff] }
   0xc   :  { %v300_v57 = vld [vmem:[%s895_s4 + $0x28] sm:$0xff]  ;;  %v769_v58 = vld [vmem:[%s894_s0 + $0x30] sm:$0xff]  ;;  %v299_v59 = vld [vmem:[%s895_s4 + $0x20] sm:$0xff] }
   0xd   :  { %313 = vmatpush.msra.mxu2 %v308_v48  ;;  %v298_v60 = vld [vmem:[%s895_s4 + $0x18] sm:$0xff]  ;;  %v297_v61 = vld [vmem:[%s895_s4 + $0x10] sm:$0xff]  ;;  %v296_v62 = vld [vmem:[%s895_s4 + $0x8] sm:$0xff] }
   0xe   :  { %v295_v63 = vld [vmem:[%s895_s4] sm:$0xff]  ;;  %v790_v0 = vld [vmem:[%s894_s0 + $0x38] sm:$0xff] }
   0xf   :  { %314 = vmatpush.msra.mxu2 %v307_v49  ;;  %v796_v1 = vld [vmem:[%s893_s3] ss:$0 sm:$0xff] }
  0x11   :  { %315 = vmatpush.msra.mxu2 %v306_v51 }
  0x13   :  { %475 = vmatmul.msk.f32.gmra.mxu0 %vm56_vm0, %v41_v3  ;;  %316 = vmatpush.msra.mxu2 %v305_v52 }
  0x15   :  { %317 = vmatpush.msra.mxu2 %v304_v53 }
  0x17   :  { %318 = vmatpush.msra.mxu2 %v303_v54 }
  0x19   :  { %319 = vmatpush.msra.mxu2 %v302_v55 }
  0x1b   :  { %476 = vmatmul.msk.f32.gmra.mxu0 %vm56_vm0, %v42_v4  ;;  %320 = vmatpush.msra.mxu2 %v301_v56 }
  0x1d   :  { %321 = vmatpush.msra.mxu2 %v300_v57 }
  0x1f   :  { %322 = vmatpush.msra.mxu2 %v299_v59 }
  0x21   :  { %323 = vmatpush.msra.mxu2 %v298_v60 }
  0x23   :  { %477 = vmatmul.msk.f32.gmra.mxu0 %vm56_vm0, %v43_v5  ;;  %324 = vmatpush.msra.mxu2 %v297_v61 }
  0x25   :  { %325 = vmatpush.msra.mxu2 %v296_v62 }
  0x27   :  { %326 = vmatpush.msra.mxu2 %v295_v63 }
  0x2b   :  { %478 = vmatmul.msk.f32.gmra.mxu0 %vm56_vm0, %v44_v6 }
  0x33   :  { %479 = vmatmul.msk.f32.gmra.mxu0 %vm56_vm0, %v45_v7 }
  0x3b   :  { %480 = vmatmul.msk.f32.gmra.mxu0 %vm56_vm0, %v46_v8 }
  0x43   :  { %481 = vmatmul.msk.f32.gmra.mxu0 %vm56_vm0, %v47_v9 }
  0x4b   :  { %482 = vmatmul.msk.f32.gmra.mxu0 %vm56_vm0, %v48_v10 }
  0x53   :  { %483 = vmatmul.msk.f32.gmra.mxu0 %vm56_vm0, %v49_v11 }
  0x5b   :  { %484 = vmatmul.msk.f32.gmra.mxu0 %vm56_vm0, %v50_v12 }
  0x63   :  { %485 = vmatmul.msk.f32.gmra.mxu0 %vm56_vm0, %v51_v13 }
  0x6b   :  { %486 = vmatmul.msk.f32.gmra.mxu0 %vm56_vm0, %v52_v14 }
  0x73   :  { %487 = vmatmul.msk.f32.gmra.mxu0 %vm56_vm0, %v53_v15 }
  0x7b   :  { %488 = vmatmul.msk.f32.gmra.mxu0 %vm56_vm0, %v54_v16 }
  0x80   :  { %v122_v17 = vpop.f32.mrf.mxu0 }
  0x88   :  { %v125_v18 = vpop.f32.mrf.mxu0 }
  0x89   :  { %v170_v19 = vpack.c.bf16 %v125_v18, %v122_v17 }
  0x90   :  { %v128_v20 = vpop.f32.mrf.mxu0 }
  0x98   :  { %v131_v21 = vpop.f32.mrf.mxu0 }
  0x99   :  { %v171_v22 = vpack.c.bf16 %v131_v21, %v128_v20 }
  0xa0   :  { %v134_v23 = vpop.f32.mrf.mxu0 }
  0xa8   :  { %v137_v24 = vpop.f32.mrf.mxu0 }
  0xa9   :  { %v172_v25 = vpack.c.bf16 %v137_v24, %v134_v23 }
  0xb0   :  { %v140_v26 = vpop.f32.mrf.mxu0 }
  0xb8   :  { %v143_v27 = vpop.f32.mrf.mxu0 }
  0xb9   :  { %v173_v28 = vpack.c.bf16 %v143_v27, %v140_v26 }
  0xc0   :  { %v146_v29 = vpop.f32.mrf.mxu0 }
  0xc8   :  { %v149_v30 = vpop.f32.mrf.mxu0 }
  0xc9   :  { %v174_v40 = vpack.c.bf16 %v149_v30, %v146_v29 }
  0xd0   :  { %v152_v31 = vpop.f32.mrf.mxu0 }
  0xd8   :  { %v155_v32 = vpop.f32.mrf.mxu0 }
  0xd9   :  { %v175_v39 = vpack.c.bf16 %v155_v32, %v152_v31 }
  0xe0   :  { %v158_v33 = vpop.f32.mrf.mxu0 }
  0xe8   :  { %v161_v34 = vpop.f32.mrf.mxu0 }
  0xe9   :  { %v176_v38 = vpack.c.bf16 %v161_v34, %v158_v33 }
  0xf0   :  { %v164_v35 = vpop.f32.mrf.mxu0 }
  0xf8   :  { %v167_v36 = vpop.f32.mrf.mxu0 }
  0xf9   :  { %v177_v37 = vpack.c.bf16 %v167_v36, %v164_v35 }
  0xfb   :  { %230 = vmatpush.bf16.msra.mxu1 %v177_v37 }
  0xff   :  { %231 = vmatpush.bf16.msra.mxu1 %v176_v38 }
 0x103   :  { %232 = vmatpush.bf16.msra.mxu1 %v175_v39 }
 0x107   :  { %233 = vmatpush.bf16.msra.mxu1 %v174_v40 }
 0x10b   :  { %234 = vmatpush.bf16.msra.mxu1 %v173_v28 }
 0x10f   :  { %235 = vmatpush.bf16.msra.mxu1 %v172_v25 }
 0x113   :  { %236 = vmatpush.bf16.msra.mxu1 %v171_v22 }
 0x117   :  { %237 = vmatpush.bf16.msra.mxu1 %v170_v19 }
 0x11a   :  { %238 = vmatmul.bf16.vlgmr.msra.gmra.mxu1 %v700_v41 }
 0x12a   :  { %243 = vmatmul.bf16.gmra.mxu1 %v706_v42 }
 0x13a   :  { %248 = vmatmul.bf16.gmra.mxu1 %v712_v43 }
 0x14a   :  { %253 = vmatmul.bf16.gmra.mxu1 %v718_v44 }
 0x15a   :  { %258 = vmatmul.bf16.gmra.mxu1 %v724_v45 }
 0x16a   :  { %263 = vmatmul.bf16.gmra.mxu1 %v742_v50 }
 0x17a   :  { %268 = vmatmul.bf16.gmra.mxu1 %v769_v58 }
 0x18a   :  { %273 = vmatmul.bf16.gmra.mxu1 %v790_v0 }
 0x197   :  { %v239_v2 = vpop.f32.mrf.mxu1 }
 0x198   :  { %v240_v3 = vadd.f32 %v796_v1, %v239_v2 }
 0x19a   :  { %531 = vtanh.f32 %v240_v3 }
 0x19f   :  { %v241_v4 = vpop.f32.mrf.mxu1 }
 0x1a0   :  { %v532_v5 = vpop.eup %531  ;;  %v242_v6 = vadd.f32 %v796_v1, %v241_v4 }
 0x1a1   :  { %327 = vmatmul.f32.vlgmr.msra.gmra.mxu2 %v532_v5 }
 0x1a2   :  { %533 = vtanh.f32 %v242_v6 }
 0x1a7   :  { %v244_v7 = vpop.f32.mrf.mxu1 }
 0x1a8   :  { %v534_v8 = vpop.eup %533  ;;  %v245_v9 = vadd.f32 %v796_v1, %v244_v7 }
 0x1a9   :  { %330 = vmatmul.f32.gmra.mxu2 %v534_v8 }
 0x1aa   :  { %535 = vtanh.f32 %v245_v9 }
 0x1af   :  { %v246_v10 = vpop.f32.mrf.mxu1 }
 0x1b0   :  { %v536_v11 = vpop.eup %535  ;;  %v247_v12 = vadd.f32 %v796_v1, %v246_v10 }
 0x1b1   :  { %333 = vmatmul.f32.gmra.mxu2 %v536_v11 }
 0x1b2   :  { %537 = vtanh.f32 %v247_v12 }
 0x1b7   :  { %v249_v13 = vpop.f32.mrf.mxu1 }
 0x1b8   :  { %v538_v14 = vpop.eup %537  ;;  %v250_v15 = vadd.f32 %v796_v1, %v249_v13 }
 0x1b9   :  { %336 = vmatmul.f32.gmra.mxu2 %v538_v14 }
 0x1ba   :  { %539 = vtanh.f32 %v250_v15 }
 0x1bf   :  { %v251_v16 = vpop.f32.mrf.mxu1 }
 0x1c0   :  { %v540_v17 = vpop.eup %539  ;;  %v252_v18 = vadd.f32 %v796_v1, %v251_v16 }
 0x1c1   :  { %339 = vmatmul.f32.gmra.mxu2 %v540_v17 }
 0x1c2   :  { %541 = vtanh.f32 %v252_v18  ;;  %v825_v18 = vld [vmem:[%s896_s5] ss:$0 sm:$0xff] }
 0x1c7   :  { %v254_v19 = vpop.f32.mrf.mxu1 }
 0x1c8   :  { %v542_v20 = vpop.eup %541  ;;  %v255_v21 = vadd.f32 %v796_v1, %v254_v19 }
 0x1c9   :  { %342 = vmatmul.f32.gmra.mxu2 %v542_v20 }
 0x1ca   :  { %543 = vtanh.f32 %v255_v21 }
 0x1cf   :  { %v256_v22 = vpop.f32.mrf.mxu1 }
 0x1d0   :  { %v544_v23 = vpop.eup %543  ;;  %v257_v24 = vadd.f32 %v796_v1, %v256_v22 }
 0x1d1   :  { %345 = vmatmul.f32.gmra.mxu2 %v544_v23 }
 0x1d2   :  { %545 = vtanh.f32 %v257_v24 }
 0x1d7   :  { %v259_v25 = vpop.f32.mrf.mxu1 }
 0x1d8   :  { %v546_v26 = vpop.eup %545  ;;  %v260_v27 = vadd.f32 %v796_v1, %v259_v25 }
 0x1d9   :  { %348 = vmatmul.f32.gmra.mxu2 %v546_v26 }
 0x1da   :  { %547 = vtanh.f32 %v260_v27 }
 0x1df   :  { %v261_v28 = vpop.f32.mrf.mxu1 }
 0x1e0   :  { %v548_v29 = vpop.eup %547  ;;  %v262_v30 = vadd.f32 %v796_v1, %v261_v28 }
 0x1e1   :  { %351 = vmatmul.f32.gmra.mxu2 %v548_v29 }
 0x1e2   :  { %549 = vtanh.f32 %v262_v30 }
 0x1e7   :  { %v264_v31 = vpop.f32.mrf.mxu1 }
 0x1e8   :  { %v550_v32 = vpop.eup %549  ;;  %v265_v33 = vadd.f32 %v796_v1, %v264_v31 }
 0x1e9   :  { %354 = vmatmul.f32.gmra.mxu2 %v550_v32 }
 0x1ea   :  { %551 = vtanh.f32 %v265_v33 }
 0x1ef   :  { %v266_v34 = vpop.f32.mrf.mxu1 }
 0x1f0   :  { %v552_v35 = vpop.eup %551  ;;  %v267_v36 = vadd.f32 %v796_v1, %v266_v34 }
 0x1f1   :  { %357 = vmatmul.f32.gmra.mxu2 %v552_v35 }
 0x1f2   :  { %553 = vtanh.f32 %v267_v36 }
 0x1f7   :  { %v269_v37 = vpop.f32.mrf.mxu1 }
 0x1f8   :  { %v554_v38 = vpop.eup %553  ;;  %v270_v39 = vadd.f32 %v796_v1, %v269_v37 }
 0x1f9   :  { %360 = vmatmul.f32.gmra.mxu2 %v554_v38 }
 0x1fa   :  { %555 = vtanh.f32 %v270_v39 }
 0x1ff   :  { %v271_v40 = vpop.f32.mrf.mxu1 }
 0x200   :  { %v556_v46 = vpop.eup %555  ;;  %v272_v47 = vadd.f32 %v796_v1, %v271_v40 }
 0x201   :  { %363 = vmatmul.f32.gmra.mxu2 %v556_v46 }
 0x202   :  { %557 = vtanh.f32 %v272_v47 }
 0x207   :  { %v274_v48 = vpop.f32.mrf.mxu1 }
 0x208   :  { %v558_v49 = vpop.eup %557  ;;  %v275_v51 = vadd.f32 %v796_v1, %v274_v48 }
 0x209   :  { %366 = vmatmul.f32.gmra.mxu2 %v558_v49 }
 0x20a   :  { %559 = vtanh.f32 %v275_v51 }
 0x20f   :  { %v276_v52 = vpop.f32.mrf.mxu1 }
 0x210   :  { %v560_v53 = vpop.eup %559  ;;  %v277_v54 = vadd.f32 %v796_v1, %v276_v52 }
 0x211   :  { %369 = vmatmul.f32.gmra.mxu2 %v560_v53 }
 0x212   :  { %561 = vtanh.f32 %v277_v54 }
 0x218   :  { %v562_v55 = vpop.eup %561 }
 0x219   :  { %372 = vmatmul.f32.gmra.mxu2 %v562_v55 }
 0x224   :  { %v328_v56 = vpop.f32.mrf.mxu2 }
 0x22c   :  { %v331_v57 = vpop.f32.mrf.mxu2 }
 0x22d   :  { %v376_v59 = vpack.c.bf16 %v331_v57, %v328_v56 }
 0x234   :  { %v334_v60 = vpop.f32.mrf.mxu2 }
 0x23c   :  { %v337_v61 = vpop.f32.mrf.mxu2 }
 0x23d   :  { %v377_v62 = vpack.c.bf16 %v337_v61, %v334_v60 }
 0x244   :  { %v340_v63 = vpop.f32.mrf.mxu2 }
 0x24c   :  { %v343_v2 = vpop.f32.mrf.mxu2 }
 0x24d   :  { %v378_v3 = vpack.c.bf16 %v343_v2, %v340_v63 }
 0x254   :  { %v346_v4 = vpop.f32.mrf.mxu2 }
 0x25c   :  { %v349_v5 = vpop.f32.mrf.mxu2 }
 0x25d   :  { %v379_v6 = vpack.c.bf16 %v349_v5, %v346_v4 }
 0x264   :  { %v352_v7 = vpop.f32.mrf.mxu2 }
 0x26c   :  { %v355_v8 = vpop.f32.mrf.mxu2 }
 0x26d   :  { %v380_v17 = vpack.c.bf16 %v355_v8, %v352_v7 }
 0x274   :  { %v358_v9 = vpop.f32.mrf.mxu2 }
 0x27c   :  { %v361_v1 = vpop.f32.mrf.mxu2 }
 0x27d   :  { %v381_v16 = vpack.c.bf16 %v361_v1, %v358_v9 }
 0x284   :  { %v364_v10 = vpop.f32.mrf.mxu2 }
 0x28c   :  { %v367_v11 = vpop.f32.mrf.mxu2 }
 0x28d   :  { %v382_v15 = vpack.c.bf16 %v367_v11, %v364_v10 }
 0x294   :  { %v370_v12 = vpop.f32.mrf.mxu2 }
 0x29c   :  { %v373_v13 = vpop.f32.mrf.mxu2 }
 0x29d   :  { %v383_v14 = vpack.c.bf16 %v373_v13, %v370_v12 }
 0x29f   :  { %388 = vmatpush.bf16.msra.mxu3 %v383_v14 }
 0x2a3   :  { %389 = vmatpush.bf16.msra.mxu3 %v382_v15 }
 0x2a7   :  { %390 = vmatpush.bf16.msra.mxu3 %v381_v16 }
 0x2ab   :  { %391 = vmatpush.bf16.msra.mxu3 %v380_v17 }
 0x2af   :  { %392 = vmatpush.bf16.msra.mxu3 %v379_v6 }
 0x2b3   :  { %393 = vmatpush.bf16.msra.mxu3 %v378_v3 }
 0x2b7   :  { %394 = vmatpush.bf16.msra.mxu3 %v377_v62 }
 0x2bb   :  { %395 = vmatpush.bf16.msra.mxu3 %v376_v59 }
 0x2be   :  { %396 = vmatmul.bf16.vlgmr.msra.gmra.mxu3 %v700_v41 }
 0x2ce   :  { %401 = vmatmul.bf16.gmra.mxu3 %v706_v42 }
 0x2de   :  { %406 = vmatmul.bf16.gmra.mxu3 %v712_v43 }
 0x2ee   :  { %411 = vmatmul.bf16.gmra.mxu3 %v718_v44 }
 0x2fe   :  { %416 = vmatmul.bf16.gmra.mxu3 %v724_v45 }
 0x30e   :  { %421 = vmatmul.bf16.gmra.mxu3 %v742_v50 }
 0x31e   :  { %426 = vmatmul.bf16.gmra.mxu3 %v769_v58 }
 0x32e   :  { %431 = vmatmul.bf16.gmra.mxu3 %v790_v0 }
 0x341   :  { %v397_v41 = vpop.f32.mrf.mxu3 }
 0x342   :  { %v398_v42 = vadd.f32 %v825_v18, %v397_v41 }
 0x344   :  { %563 = vtanh.f32 %v398_v42 }
 0x349   :  { %v399_v43 = vpop.f32.mrf.mxu3 }
 0x34a   :  { %v564_v19 = vpop.eup %563  ;;  %v400_v44 = vadd.f32 %v825_v18, %v399_v43 }
 0x34b   :  { %453 = vst [vmem:[%s897_s6] sm:$0xff] %v564_v19 }
 0x34c   :  { %565 = vtanh.f32 %v400_v44 }
 0x351   :  { %v402_v45 = vpop.f32.mrf.mxu3 }
 0x352   :  { %v566_v50 = vpop.eup %565  ;;  %v403_v58 = vadd.f32 %v825_v18, %v402_v45 }
 0x353   :  { %454 = vst [vmem:[%s897_s6 + $0x8] sm:$0xff] %v566_v50 }
 0x354   :  { %567 = vtanh.f32 %v403_v58 }
 0x359   :  { %v404_v0 = vpop.f32.mrf.mxu3 }
 0x35a   :  { %v568_v20 = vpop.eup %567  ;;  %v405_v21 = vadd.f32 %v825_v18, %v404_v0 }
 0x35b   :  { %455 = vst [vmem:[%s897_s6 + $0x10] sm:$0xff] %v568_v20 }
 0x35c   :  { %569 = vtanh.f32 %v405_v21 }
 0x361   :  { %v407_v22 = vpop.f32.mrf.mxu3 }
 0x362   :  { %v570_v23 = vpop.eup %569  ;;  %v408_v24 = vadd.f32 %v825_v18, %v407_v22 }
 0x363   :  { %456 = vst [vmem:[%s897_s6 + $0x18] sm:$0xff] %v570_v23 }
 0x364   :  { %571 = vtanh.f32 %v408_v24 }
 0x369   :  { %v409_v25 = vpop.f32.mrf.mxu3 }
 0x36a   :  { %v572_v26 = vpop.eup %571  ;;  %v410_v27 = vadd.f32 %v825_v18, %v409_v25 }
 0x36b   :  { %457 = vst [vmem:[%s897_s6 + $0x20] sm:$0xff] %v572_v26 }
 0x36c   :  { %573 = vtanh.f32 %v410_v27 }
 0x371   :  { %v412_v28 = vpop.f32.mrf.mxu3 }
 0x372   :  { %v574_v29 = vpop.eup %573  ;;  %v413_v30 = vadd.f32 %v825_v18, %v412_v28 }
 0x373   :  { %458 = vst [vmem:[%s897_s6 + $0x28] sm:$0xff] %v574_v29 }
 0x374   :  { %575 = vtanh.f32 %v413_v30 }
 0x379   :  { %v414_v31 = vpop.f32.mrf.mxu3 }
 0x37a   :  { %v576_v32 = vpop.eup %575  ;;  %v415_v33 = vadd.f32 %v825_v18, %v414_v31 }
 0x37b   :  { %459 = vst [vmem:[%s897_s6 + $0x30] sm:$0xff] %v576_v32 }
 0x37c   :  { %577 = vtanh.f32 %v415_v33 }
 0x381   :  { %v417_v34 = vpop.f32.mrf.mxu3 }
 0x382   :  { %v578_v35 = vpop.eup %577  ;;  %v418_v36 = vadd.f32 %v825_v18, %v417_v34 }
 0x383   :  { %460 = vst [vmem:[%s897_s6 + $0x38] sm:$0xff] %v578_v35 }
 0x384   :  { %579 = vtanh.f32 %v418_v36 }
 0x389   :  { %v419_v37 = vpop.f32.mrf.mxu3 }
 0x38a   :  { %v580_v38 = vpop.eup %579  ;;  %v420_v39 = vadd.f32 %v825_v18, %v419_v37 }
 0x38b   :  { %461 = vst [vmem:[%s897_s6 + $0x40] sm:$0xff] %v580_v38 }
 0x38c   :  { %581 = vtanh.f32 %v420_v39 }
 0x391   :  { %v422_v40 = vpop.f32.mrf.mxu3 }
 0x392   :  { %v582_v46 = vpop.eup %581  ;;  %v423_v47 = vadd.f32 %v825_v18, %v422_v40 }
 0x393   :  { %462 = vst [vmem:[%s897_s6 + $0x48] sm:$0xff] %v582_v46 }
 0x394   :  { %583 = vtanh.f32 %v423_v47 }
 0x399   :  { %v424_v48 = vpop.f32.mrf.mxu3 }
 0x39a   :  { %v584_v49 = vpop.eup %583  ;;  %v425_v51 = vadd.f32 %v825_v18, %v424_v48 }
 0x39b   :  { %463 = vst [vmem:[%s897_s6 + $0x50] sm:$0xff] %v584_v49 }
 0x39c   :  { %585 = vtanh.f32 %v425_v51 }
 0x3a1   :  { %v427_v52 = vpop.f32.mrf.mxu3 }
 0x3a2   :  { %v586_v53 = vpop.eup %585  ;;  %v428_v54 = vadd.f32 %v825_v18, %v427_v52 }
 0x3a3   :  { %464 = vst [vmem:[%s897_s6 + $0x58] sm:$0xff] %v586_v53 }
 0x3a4   :  { %587 = vtanh.f32 %v428_v54 }
 0x3a9   :  { %v429_v55 = vpop.f32.mrf.mxu3 }
 0x3aa   :  { %v588_v56 = vpop.eup %587  ;;  %v430_v57 = vadd.f32 %v825_v18, %v429_v55 }
 0x3ab   :  { %465 = vst [vmem:[%s897_s6 + $0x60] sm:$0xff] %v588_v56 }
 0x3ac   :  { %589 = vtanh.f32 %v430_v57 }
 0x3b1   :  { %v432_v59 = vpop.f32.mrf.mxu3 }
 0x3b2   :  { %v590_v60 = vpop.eup %589  ;;  %v433_v61 = vadd.f32 %v825_v18, %v432_v59 }
 0x3b3   :  { %466 = vst [vmem:[%s897_s6 + $0x68] sm:$0xff] %v590_v60 }
 0x3b4   :  { %591 = vtanh.f32 %v433_v61 }
 0x3b9   :  { %v434_v62 = vpop.f32.mrf.mxu3 }
 0x3ba   :  { %v592_v63 = vpop.eup %591  ;;  %v435_v2 = vadd.f32 %v825_v18, %v434_v62 }
 0x3bb   :  { %467 = vst [vmem:[%s897_s6 + $0x70] sm:$0xff] %v592_v63 }
 0x3bc   :  { %593 = vtanh.f32 %v435_v2 }
 0x3c2   :  { %v594_v3 = vpop.eup %593 }
 0x3c3   :  { %468 = vst [vmem:[%s897_s6 + $0x78] sm:$0xff] %v594_v3 }

</bundles_post_ra>
